<compile_context>
chip_gen: v7x
topology: tpu7x:2x2x1
jax: 0.10.0
libtpu: 0.0.40
codegen_flags: <defaults>
</compile_context>

<pallas_src>
import jax
import jax.numpy as jnp
import numpy as np
from jax.experimental import pallas as pl
from jax.experimental.pallas import tpu as pltpu


def quaternion_linear_kernel(x_ref, w_ref, b_ref, o_ref):
    # One fused MXU matmul with K = 4*I (instead of 16 K=I dots), f32 accumulation,
    # f32 bias add, and a single lane-dense output store.
    acc = jnp.dot(x_ref[...], w_ref[...], preferred_element_type=jnp.float32)
    o_ref[...] = (acc + b_ref[...]).astype(o_ref.dtype)


def assemble_quaternion_weight(r_w, i_w, j_w, k_w, dtype):
    """Signed quaternion block matrix; identical layout to cat_kernels_4_quaternion."""
    cat_r = jnp.concatenate([r_w, -i_w, -j_w, -k_w], axis=0)
    cat_i = jnp.concatenate([i_w, r_w, -k_w, j_w], axis=0)
    cat_j = jnp.concatenate([j_w, k_w, r_w, -i_w], axis=0)
    cat_k = jnp.concatenate([k_w, -j_w, i_w, r_w], axis=0)
    return jnp.concatenate([cat_r, cat_i, cat_j, cat_k], axis=1).astype(dtype)


def _select_tiles(M, K, N, in_itemsize, out_itemsize, vmem_budget_bytes):
    """Pick (tm, tn) so the pipelined VMEM footprint stays inside the budget.

    Footprint per core:
      2 x  x tile   (tm * K  * in_itemsize)   double-buffered
      2 x  out tile (tm * tn * out_itemsize)  double-buffered
      1 x  W slab   (K  * tn * in_itemsize)   Buffered(1), invariant over the batch loop
      1 x  bias     (tn * 4)
    """
    # Output-column tile: largest lane-dense divisor of N.  Keeps each dot MXU-friendly and
    # caps the W slab / out double-buffers independent of total 4O.
    if N <= 512:
        tn = N
    else:
        tn = N
        for cand in (512, 256, 128):
            if N % cand == 0:
                tn = cand
                break
        # TODO(synk): production shapes should have 4*out_features a multiple of 128 (pad in
        # the wrapper otherwise) so the output stores stay lane-dense (no vst.msk).

    fixed = K * tn * in_itemsize + tn * 4
    per_row = 2 * (K * in_itemsize + tn * out_itemsize)
    tm_cap = max((vmem_budget_bytes - fixed) // per_row, 8)
    tm_cap = int(min(tm_cap, 1024))
    if M <= tm_cap:
        tm = M
    else:
        tm = max(8, (tm_cap // 8) * 8)

    total = fixed + per_row * tm
    return tm, tn, total


def quaternion_linear(x, r_w, i_w, j_w, k_w, bias, *,
                      compute_dtype=jnp.bfloat16,
                      vmem_budget_bytes=24 * 1024 * 1024):
    """x: (batch, 4*in_f) -> (batch, 4*out_f), matching quaternion_linear()."""
    M, F = x.shape
    I, O = r_w.shape
    assert F == 4 * I, (F, I)
    K, N = 4 * I, 4 * O

    # Assemble the signed block matrix once per call (XLA concat/negate) -- never per tile.
    W = assemble_quaternion_weight(r_w, i_w, j_w, k_w, compute_dtype)
    xc = x.astype(compute_dtype)
    b2d = bias.reshape(1, N).astype(jnp.float32)  # bias stays f32, added post-accumulate

    in_itemsize = jnp.dtype(compute_dtype).itemsize
    out_itemsize = jnp.dtype(x.dtype).itemsize
    tm, tn, vmem_need = _select_tiles(M, K, N, in_itemsize, out_itemsize,
                                      vmem_budget_bytes)
    grid_m = pl.cdiv(M, tm)
    grid_n = pl.cdiv(N, tn)

    # n is the OUTER grid axis so the (K, tn) W slab and bias slab are index-invariant over
    # the inner batch loop (fetched once, VMEM-resident).  Both axes are independent.
    if grid_n == 1:
        # Truly invariant -> single-buffered: no wasted double-buffer VMEM.
        w_spec = pl.BlockSpec((K, tn), lambda n, m: (0, n),
                              pipeline_mode=pl.Buffered(1))
        b_spec = pl.BlockSpec((1, tn), lambda n, m: (0, n),
                              pipeline_mode=pl.Buffered(1))
    else:
        w_spec = pl.BlockSpec((K, tn), lambda n, m: (0, n))
        b_spec = pl.BlockSpec((1, tn), lambda n, m: (0, n))

    cost = pl.CostEstimate(
        flops=2 * M * K * N,
        transcendentals=0,
        bytes_accessed=(M * K * in_itemsize + K * N * in_itemsize
                        + N * 4 + M * N * out_itemsize),
    )
    # Explicit scoped-VMEM limit: raises v5e's 16 MiB default, stays <= v7x's 64 MiB physical.
    vmem_limit = int(min(max(2 * vmem_need, 16 * 1024 * 1024), 64 * 1024 * 1024))

    return pl.pallas_call(
        quaternion_linear_kernel,
        out_shape=jax.ShapeDtypeStruct((M, N), x.dtype),
        grid=(grid_n, grid_m),
        in_specs=[
            pl.BlockSpec((tm, K), lambda n, m: (m, 0)),  # x row tile
            w_spec,                                      # assembled W column slab
            b_spec,                                      # bias slab
        ],
        out_specs=pl.BlockSpec((tm, tn), lambda n, m: (m, n)),
        compiler_params=pltpu.CompilerParams(
            dimension_semantics=("parallel", "parallel"),
            vmem_limit_bytes=vmem_limit,
        ),
        cost_estimate=cost,
    )(xc, W, b2d)


def quaternion_linear_reference(x, r_w, i_w, j_w, k_w, bias):
    # Pure-JAX reference matching quaternion_linear() in quaternion_layers.py.
    cat_r = jnp.concatenate([r_w, -i_w, -j_w, -k_w], axis=0)
    cat_i = jnp.concatenate([i_w, r_w, -k_w, j_w], axis=0)
    cat_j = jnp.concatenate([j_w, k_w, r_w, -i_w], axis=0)
    cat_k = jnp.concatenate([k_w, -j_w, i_w, r_w], axis=0)
    W = jnp.concatenate([cat_r, cat_i, cat_j, cat_k], axis=1)
    return x @ W + bias


if __name__ == "__main__":
    # Module config: in_features=32, out_features=32  ->  per-component I=8, O=8
    in_features, out_features = 32, 32
    I, O = in_features // 4, out_features // 4
    batch = 8

    key = jax.random.PRNGKey(0)
    kx, kr, ki, kj, kk = jax.random.split(key, 5)

    # Deterministic glorot-scale uniform init, s = 1/sqrt(2*(fan_in+fan_out)).
    # TODO(synk): exact quaternion_init draws chi-distributed magnitudes from a numpy
    # RandomState; this deterministic uniform init preserves shapes/scale, not distribution.
    s = 1.0 / np.sqrt(2.0 * (I + O))
    r_w = jax.random.uniform(kr, (I, O), jnp.float32, -s, s)
    i_w = jax.random.uniform(ki, (I, O), jnp.float32, -s, s)
    j_w = jax.random.uniform(kj, (I, O), jnp.float32, -s, s)
    k_w = jax.random.uniform(kk, (I, O), jnp.float32, -s, s)
    bias = jnp.zeros((4 * O,), jnp.float32)  # PyTorch: bias.data.fill_(0)

    x = jax.random.normal(kx, (batch, 4 * I), jnp.float32)

    ref = quaternion_linear_reference(x, r_w, i_w, j_w, k_w, bias)

    # float32 path: tight-tolerance validation against the reference.
    out_f32 = jax.block_until_ready(
        quaternion_linear(x, r_w, i_w, j_w, k_w, bias, compute_dtype=jnp.float32))
    np.testing.assert_allclose(np.asarray(out_f32), np.asarray(ref), rtol=1e-5, atol=1e-5)

    # bf16 MXU path (production default): f32 accumulation, bf16-appropriate tolerance.
    out_bf16 = jax.block_until_ready(
        quaternion_linear(x, r_w, i_w, j_w, k_w, bias))
    np.testing.assert_allclose(np.asarray(out_bf16), np.asarray(ref), rtol=3e-2, atol=3e-2)

    print("KERNEL_OK")
</pallas_src>

<mosaic_0001>
module attributes {stable_mosaic.version = 11 : i64} {
  func.func @quaternion_linear_kernel(%arg0: i32, %arg1: i32, %arg2: memref<8x32xf32, #tpu.memory_space<vmem>>, %arg3: memref<32x32xf32, #tpu.memory_space<vmem>>, %arg4: memref<1x32xf32, #tpu.memory_space<vmem>>, %arg5: memref<8x32xf32, #tpu.memory_space<vmem>>) attributes {dimension_semantics = [#tpu.dimension_semantics<parallel>, #tpu.dimension_semantics<parallel>], iteration_bounds = array<i64: 1, 1>, scalar_prefetch = 0 : i64, scratch_operands = 0 : i64, tpu.core_type = #tpu.core_type<tc>, window_params = [{transform_indices = @transform_0, window_bounds = array<i64: 8, 32>}, {pipeline_mode = #tpu.pipeline_mode<synchronous>, transform_indices = @transform_1, window_bounds = array<i64: 32, 32>}, {pipeline_mode = #tpu.pipeline_mode<synchronous>, transform_indices = @transform_2, window_bounds = array<i64: 1, 32>}, {transform_indices = @transform_3, window_bounds = array<i64: 8, 32>}]} {
    %c0 = arith.constant 0 : index
    %c0_0 = arith.constant 0 : index
    %0 = vector.load %arg2[%c0, %c0_0] : memref<8x32xf32, #tpu.memory_space<vmem>>, vector<8x32xf32>
    %c0_1 = arith.constant 0 : index
    %c0_2 = arith.constant 0 : index
    %1 = vector.load %arg3[%c0_1, %c0_2] : memref<32x32xf32, #tpu.memory_space<vmem>>, vector<32x32xf32>
    %cst = arith.constant dense<0.000000e+00> : vector<8x32xf32>
    %2 = tpu.matmul %0, %1, %cst {dimension_numbers = #tpu.dot_dimension_numbers<[1], [0], [0], [1], [0, 0, 1, 1], [], []>} : vector<8x32xf32>, vector<32x32xf32>, vector<8x32xf32> -> vector<8x32xf32>
    %c0_3 = arith.constant 0 : index
    %c0_4 = arith.constant 0 : index
    %3 = vector.load %arg4[%c0_3, %c0_4] : memref<1x32xf32, #tpu.memory_space<vmem>>, vector<1x32xf32>
    %4 = vector.broadcast %3 : vector<1x32xf32> to vector<8x32xf32>
    %5 = arith.addf %2, %4 : vector<8x32xf32>
    %c0_5 = arith.constant 0 : index
    %c0_6 = arith.constant 0 : index
    %6 = vector.load %arg5[%c0_5, %c0_6] : memref<8x32xf32, #tpu.memory_space<vmem>>, vector<8x32xf32>
    tpu.vector_store %arg5[%c0_5, %c0_6], %5 {strides = array<i32>} : memref<8x32xf32, #tpu.memory_space<vmem>>, vector<8x32xf32>,
    return
  }
  func.func @transform_0(%arg0: i32, %arg1: i32) -> (i32, i32) {
    %c0_i32 = arith.constant 0 : i32
    %c0_i32_0 = arith.constant 0 : i32
    return %arg1, %c0_i32 : i32, i32
  }
  func.func @transform_1(%arg0: i32, %arg1: i32) -> (i32, i32) {
    %c0_i32 = arith.constant 0 : i32
    %c0_i32_0 = arith.constant 0 : i32
    return %c0_i32, %arg0 : i32, i32
  }
  func.func @transform_2(%arg0: i32, %arg1: i32) -> (i32, i32) {
    %c0_i32 = arith.constant 0 : i32
    %c0_i32_0 = arith.constant 0 : i32
    return %c0_i32, %arg0 : i32, i32
  }
  func.func @transform_3(%arg0: i32, %arg1: i32) -> (i32, i32) {
    %c0_i32 = arith.constant 0 : i32
    return %arg1, %arg0 : i32, i32
  }
}

</mosaic_0001>

<bundles_post_ra>
// kernel: tpu_custom_call.1
= control target key start
LH: loop header
LB: loop body
LE: loop exit
PB: predicated region body
PF: predicated region fallthrough
CT: control target
= control target key end

     0   :  { %8 = vsyncpa [#allocation3], 0  ;;  %s322_s0 = inlined_call_operand.hbm [shape: f32[8,32], index: 0, kind: input, shape index: {}]   ;;  %s323_s1 = inlined_call_operand.hbm [shape: f32[32,32], index: 1, kind: input, shape index: {}]   ;;  %s324_s2 = inlined_call_operand.vmem [shape: f32[1,32], index: 2, kind: input, shape index: {}]   ;;  %s325_s3 = inlined_call_operand.hbm [shape: f32[8,32], index: 3, kind: output, shape index: {}]  }
   0x1   :  { %9 = vsyncpa [#allocation6], 0 }
   0x2   :  { %10 = vsyncpa [#allocation4], 0  ;;  %s248_s12 = smov [#allocation2]   ;;  %s249_s14 = smov [#allocation5]  }
   0x3   :  { %s17_s13 = sshll.u32 %s248_s12, 4  ;;  %s26_s15 = sshll.u32 %s249_s14, 4  ;;  %s18_s13 = int_to_ptr.vmem [resolvable:$true] %s17_s13  ;;  %s276_s15 = int_to_ptr.vmem [resolvable:$true] %s26_s15 }
   0x4   :  { %s176_s18 = scalar_lea.hbm %s322_s0, 128 }
   0x5   :  { %p177_p0 = scmp.ne.s32.totalorder %s322_s0, %s176_s18  ;;  %p180_p1 = scmp.lt.u32.totalorder %s176_s18, %s322_s0 }
   0x7   :  { %p182_p2 = pnand %p180_p1, %p177_p0 }
   0x9   :  { %185 = shalt.err (!%p182_p2)
}
   0xa   :  { %s186_s23 = scalar_lea.vmem %s18_s13, 128  ;;  %p191_p4 = scmp.lt.s32.totalorder %s18_s13, %s18_s13 }
   0xb   :  { %p187_p3 = scmp.ne.s32.totalorder %s18_s13, %s186_s23  ;;  %p192_p5 = scmp.lt.s32.totalorder %s186_s23, %s186_s23 }
   0xd   :  { %p193_p6 = por %p192_p5, %p191_p4 }
   0xf   :  { %p194_p7 = pnand %p193_p6, %p187_p3 }
  0x11   :  { %197 = shalt.err (!%p194_p7)
}
  0x12   :  { %20 = dma.hbm_to_vmem [thread:$0]  %s322_s0, 128, %s18_s13, [#allocation3]  }
  0x13   :  { %s198_s28 = scalar_lea.hbm %s323_s1, 512 }
  0x14   :  { %p199_p8 = scmp.ne.s32.totalorder %s323_s1, %s198_s28  ;;  %p202_p9 = scmp.lt.u32.totalorder %s198_s28, %s323_s1 }
  0x16   :  { %p204_p10 = pnand %p202_p9, %p199_p8 }
  0x18   :  { %207 = shalt.err (!%p204_p10)
}
  0x19   :  { %s208_s6 = scalar_lea.vmem %s276_s15, 512  ;;  %p213_p12 = scmp.lt.s32.totalorder %s276_s15, %s276_s15 }
  0x1a   :  { %p209_p11 = scmp.ne.s32.totalorder %s276_s15, %s208_s6  ;;  %p214_p13 = scmp.lt.s32.totalorder %s208_s6, %s208_s6 }
  0x1c   :  { %p215_p0 = por %p214_p13, %p213_p12 }
  0x1e   :  { %p216_p1 = pnand %p215_p0, %p209_p11 }
  0x20   :  { %219 = shalt.err (!%p216_p1)
}
  0x21   :  { %s250_s0 = smov 128   ;;  %s251_s7 = smov 8  }
  0x22   :  { %32 = dma.hbm_to_vmem [thread:$0]  %s323_s1, 512, %s276_s15, [#allocation6], %s250_s0, %s250_s0, %s251_s7  }
  0x23   :  { %242 = dma.done.wait [#allocation3], 128  }
  0x24   :  { %243 = vsyncadd [#allocation3], 4294967168 }
  0x25   :  { %244 = dma.done.wait [#allocation6], 512  }
  0x26   :  { %245 = vsyncadd [#allocation6], 4294966784  ;;  %v252_v0 = vmov 0.0|0.0   ;;  %vm253_vm0 = vmmov 0   ;;  %v254_v1 = vmov 0.0   ;;  %v42_v2 = vld [vmem:[#allocation5] sm:$0xff] }
  0x27   :  { %162 = vmatprep.subr.bf16.mxu0 %v252_v0  ;;  %159 = vmatprep.mubr.msk.f32.mxu0 %vm253_vm0, %v254_v1  ;;  %v43_v3 = vld [vmem:[#allocation5 + $0x8] sm:$0xff]  ;;  %v44_v4 = vld [vmem:[#allocation5 + $0x10] sm:$0xff]  ;;  %v45_v6 = vld [vmem:[#allocation5 + $0x18] sm:$0xff]  ;;  %vm53_vm1 = vcmask 261120   ;;  %s255_s11 = smov [#allocation7]  }
  0x28   :  { %v163_v5 = vpack.c.bf16 %v43_v3, %v42_v2  ;;  %v166_v7 = vpack.c.bf16 %v45_v6, %v44_v4  ;;  %v41_v8 = vld [vmem:[#allocation2] sm:$0xff]  ;;  %s134_s12 = sshll.u32 %s255_s11, 4  ;;  %s135_s12 = int_to_ptr.vmem [resolvable:$true] %s134_s12 }
  0x29   :  { %v144_v9 = vld [vmem:[%s324_s2] ss:$0 sm:$0xff]  ;;  %s220_s13 = scalar_lea.vmem %s135_s12, 128  ;;  %p225_p3 = scmp.lt.s32.totalorder %s135_s12, %s135_s12 }
  0x2a   :  { %164 = vmatpush3.bf16.msra.mxu0 %v163_v5  ;;  %p221_p2 = scmp.ne.s32.totalorder %s135_s12, %s220_s13  ;;  %p226_p4 = scmp.lt.s32.totalorder %s220_s13, %s220_s13 }
  0x2b   :  { %165 = vmatprep.subr.bf16.mxu0 %v252_v0 }
  0x2c   :  { %p227_p5 = por %p226_p4, %p225_p3 }
  0x2e   :  { %167 = vmatpush3.bf16.msra.mxu0 %v166_v7  ;;  %p228_p6 = pnand %p227_p5, %p221_p2 }
  0x31   :  { %160 = vmatmul.mubr.msk.f32.vlgmr.msra.gmra.mrb[0].mxu0 %vm53_vm1, %v41_v8 }
 0x104   :  { %v123_v10 = vpop.f32.mrb[0].mxu0 }
 0x105   :  { %v124_v11 = vadd.f32 %v144_v9, %v123_v10  ;;  %v161_v12 = vpop.f32.mrb[1].mxu0 }
 0x107   :  { %127 = vst.msk [vmem:[#allocation7] sm:$0xff] %vm53_vm1, %v124_v11 }
 0x108   :  { %231 = shalt.err (!%p228_p6)
}
 0x109   :  { %s232_s16 = scalar_lea.hbm %s325_s3, 128 }
 0x10a   :  { %p233_p7 = scmp.ne.s32.totalorder %s325_s3, %s232_s16  ;;  %p236_p8 = scmp.lt.u32.totalorder %s232_s16, %s325_s3 }
 0x10c   :  { %p238_p9 = pnand %p236_p8, %p233_p7 }
 0x10e   :  { %241 = shalt.err (!%p238_p9)
}
 0x10f   :  { %137 = dma.vmem_to_hbm [thread:$0]  %s135_s12, 128, %s325_s3, [#allocation4]  }
 0x110   :  { %246 = dma.done.wait [#allocation4], 128  }
 0x111   :  { %247 = vsyncadd [#allocation4], 4294967168 }
 0x112   :  { %141 = vsyncpa [#allocation3], 1 }
 0x113   :  { %142 = vsyncpa [#allocation6], 1 }
 0x114   :  { %143 = vsyncpa [#allocation4], 1 }

</bundles_post_ra>
